<compile_context>
chip_gen: v6e
topology: v6e:2x2x1
jax: 0.10.0
libtpu: 0.0.40
codegen_flags: <defaults>
</compile_context>

<pallas_src>
import math

import jax
import jax.numpy as jnp
from jax.experimental import pallas as pl
from jax.experimental.pallas import tpu as pltpu


def _sdpa_kernel(x_ref, w_ref, b_ref, lens_ref, o_ref):
    """One (Bt, S, D) batch-tile per grid step.

    x_ref:    (Bt, S, D)  f32   input tile
    w_ref:    (D, 3*Dp)   bf16  fused [Wq*inv_scale | Wk | Wv], (in, out),
                                each segment zero-padded to Dp (128-multiple)
    b_ref:    (1, 3*Dp)   f32   fused (padded, Q-scaled) biases
    lens_ref: (Bt, 1, 1)  i32   event lengths for this tile
    o_ref:    (Bt, S, D)  f32   output tile
    """
    bt, s, d = x_ref.shape
    dp = w_ref.shape[1] // 3

    # Fused QKV projection: flatten (Bt,S,D)->(Bt*S,D) so one MXU matmul sees
    # Bt*S rows (better M-fill); the reshapes are layout-free for S % 8 == 0.
    x2d = x_ref[...].reshape(bt * s, d).astype(jnp.bfloat16)
    qkv = jnp.dot(x2d, w_ref[...], preferred_element_type=jnp.float32)
    qkv = (qkv + b_ref[...]).reshape(bt, s, 3 * dp)        # (Bt, S, 3*Dp) f32

    # Lane-aligned slices (dp % 128 == 0); attention scale already folded in Q.
    q = qkv[:, :, :dp]
    k = qkv[:, :, dp:2 * dp]
    v = qkv[:, :, 2 * dp:]

    # Scaled attention scores (Bt, S, S); zero-padded columns contribute 0.
    scores = jnp.einsum('bqd,bkd->bqk', q.astype(jnp.bfloat16),
                        k.astype(jnp.bfloat16),
                        preferred_element_type=jnp.float32)

    # Event-length mask: rows/cols >= event_lengths[b] get -1e9 (kept finite so
    # fully-masked rows stay NaN-free, matching the PyTorch reference).
    neg = jnp.float32(-1e9)
    lens = lens_ref[...]                                    # (Bt, 1, 1) int32
    col = jax.lax.broadcasted_iota(jnp.int32, (1, 1, s), 2)
    row = jax.lax.broadcasted_iota(jnp.int32, (1, s, 1), 1)
    scores = jnp.where(col < lens, scores, neg)
    scores = jnp.where(row < lens, scores, neg)

    # Numerically-stable softmax over the last axis (f32 on VPU/EUP).
    m = jnp.max(scores, axis=-1, keepdims=True)
    p = jnp.exp(scores - m)
    attn = p * pl.reciprocal(jnp.sum(p, axis=-1, keepdims=True), approx=True)

    # Dropout: identity in eval mode.

    out = jnp.einsum('bqk,bkd->bqd', attn.astype(jnp.bfloat16),
                     v.astype(jnp.bfloat16),
                     preferred_element_type=jnp.float32)    # (Bt, S, Dp)
    # Drop the zero-padded value columns (slice starts at lane 0 -> cheap).
    o_ref[...] = out[:, :, :d].astype(o_ref.dtype)


def scaled_dot_product_attention(x, params, event_lengths=None,
                                 block_batch=None):
    """x: (B, S, D) f32; event_lengths: (B,) int or None; params: PyTorch-style
    (out, in) weights 'wq','wk','wv' and biases 'bq','bk','bv'."""
    B, S, D = x.shape
    inv_scale = 1.0 / math.sqrt(float(D))

    # Pad each Q/K/V segment to a 128-lane multiple so in-kernel slices are
    # lane-tile-aligned.
    Dp = ((D + 127) // 128) * 128

    def prep_w(w, scale=1.0):
        wt = w.T.astype(jnp.float32) * scale                # (in, out)
        if Dp != D:
            wt = jnp.pad(wt, ((0, 0), (0, Dp - D)))
        return wt

    def prep_b(bvec, scale=1.0):
        bvec = bvec.astype(jnp.float32) * scale
        if Dp != D:
            bvec = jnp.pad(bvec, (0, Dp - D))
        return bvec

    # One-time host prep: transpose to (in,out), fold 1/sqrt(D) into the Q
    # columns, fuse along the output axis, cast weight to bf16 for the MXU
    # (bias stays f32; it is added to the f32 accumulator).
    w_qkv = jnp.concatenate(
        [prep_w(params["wq"], inv_scale), prep_w(params["wk"]),
         prep_w(params["wv"])], axis=1).astype(jnp.bfloat16)          # (D, 3*Dp)
    b_qkv = jnp.concatenate(
        [prep_b(params["bq"], inv_scale), prep_b(params["bk"]),
         prep_b(params["bv"])]).reshape(1, 3 * Dp)                    # (1, 3*Dp)

    if event_lengths is None:
        event_lengths = jnp.full((B,), S, dtype=jnp.int32)
    lens3d = event_lengths.astype(jnp.int32).reshape(B, 1, 1)

    # Batch-tile size: pack several batch elements per grid step to amortize
    # per-step overhead, but keep >= 2 steps so the "parallel" grid axis still
    # feeds both TensorCores on v7x (on v5e/v6e it is simply harmless).
    if block_batch is None:
        if B >= 2:
            block_batch = max(f for f in range(1, B // 2 + 1) if B % f == 0)
        else:
            block_batch = B
    Bt = block_batch
    assert B % Bt == 0, "block_batch must divide batch size"
    grid = (B // Bt,)

    x_spec = pl.BlockSpec((Bt, S, D), lambda i: (i, 0, 0))
    grid_spec = pltpu.PrefetchScalarGridSpec(
        num_scalar_prefetch=0,
        grid=grid,
        in_specs=[x_spec,
                  pl.BlockSpec((D, 3 * Dp), lambda i: (0, 0)),
                  pl.BlockSpec((1, 3 * Dp), lambda i: (0, 0)),
                  pl.BlockSpec((Bt, 1, 1), lambda i: (i, 0, 0))],
        out_specs=x_spec,
    )

    return pl.pallas_call(
        _sdpa_kernel,
        out_shape=jax.ShapeDtypeStruct((B, S, D), x.dtype),
        grid_spec=grid_spec,
        compiler_params=pltpu.CompilerParams(
            dimension_semantics=("parallel",),
            vmem_limit_bytes=64 * 1024 * 1024,   # <= physical VMEM on all gens
        ),
    )(x, w_qkv, b_qkv, lens3d)


def _reference(x, params, event_lengths):
    """Pure-JAX f32 reference mirroring the PyTorch forward (eval mode)."""
    B, S, D = x.shape
    q = x @ params["wq"].T + params["bq"]
    k = x @ params["wk"].T + params["bk"]
    v = x @ params["wv"].T + params["bv"]
    scores = jnp.einsum("bqd,bkd->bqk", q, k) / jnp.sqrt(jnp.float32(D))
    row = jnp.arange(S).reshape(1, S, 1)
    col = jnp.arange(S).reshape(1, 1, S)
    lens = event_lengths.reshape(B, 1, 1)
    mask = (row < lens) & (col < lens)
    scores = jnp.where(mask, scores, -1e9)
    attn = jax.nn.softmax(scores, axis=-1)
    return jnp.einsum("bqk,bkd->bqd", attn, v)


if __name__ == "__main__":
    B, S, D = 4, 8, 32
    key = jax.random.PRNGKey(0)
    kx, kq, kbq, kk, kbk, kv, kbv = jax.random.split(key, 7)

    x = jax.random.normal(kx, (B, S, D), dtype=jnp.float32)
    bound = 1.0 / math.sqrt(D)   # PyTorch nn.Linear default init range
    params = {
        "wq": jax.random.uniform(kq, (D, D), jnp.float32, -bound, bound),
        "bq": jax.random.uniform(kbq, (D,), jnp.float32, -bound, bound),
        "wk": jax.random.uniform(kk, (D, D), jnp.float32, -bound, bound),
        "bk": jax.random.uniform(kbk, (D,), jnp.float32, -bound, bound),
        "wv": jax.random.uniform(kv, (D, D), jnp.float32, -bound, bound),
        "bv": jax.random.uniform(kbv, (D,), jnp.float32, -bound, bound),
    }
    event_lengths = jnp.array([6, 3, 8, 1], dtype=jnp.int32)

    out = scaled_dot_product_attention(x, params, event_lengths)
    out = jax.block_until_ready(out)

    ref = _reference(x, params, event_lengths)
    assert out.shape == (B, S, D)
    max_err = float(jnp.max(jnp.abs(out - ref)))
    # bf16 MXU inputs (f32 accumulation) + approx reciprocal -> loosened tol.
    assert jnp.allclose(out, ref, atol=3e-2, rtol=3e-2), (
        f"mismatch vs reference (max abs err {max_err})")

    print("KERNEL_OK")
</pallas_src>

<mosaic_0001>
module attributes {stable_mosaic.version = 11 : i64} {
  func.func @_sdpa_kernel(%arg0: i32, %arg1: memref<2x8x32xf32, #tpu.memory_space<vmem>>, %arg2: memref<32x384xbf16, #tpu.memory_space<vmem>>, %arg3: memref<1x384xf32, #tpu.memory_space<vmem>>, %arg4: memref<2x1x1xi32, #tpu.memory_space<vmem>>, %arg5: memref<2x8x32xf32, #tpu.memory_space<vmem>>) attributes {dimension_semantics = [#tpu.dimension_semantics<parallel>], iteration_bounds = array<i64: 2>, scalar_prefetch = 0 : i64, scratch_operands = 0 : i64, tpu.core_type = #tpu.core_type<tc>, window_params = [{transform_indices = @transform_0, window_bounds = array<i64: 2, 8, 32>}, {pipeline_mode = #tpu.pipeline_mode<synchronous>, transform_indices = @transform_1, window_bounds = array<i64: 32, 384>}, {pipeline_mode = #tpu.pipeline_mode<synchronous>, transform_indices = @transform_2, window_bounds = array<i64: 1, 384>}, {transform_indices = @transform_3, window_bounds = array<i64: 2, 1, 1>}, {transform_indices = @transform_4, window_bounds = array<i64: 2, 8, 32>}]} {
    %c0 = arith.constant 0 : index
    %c0_0 = arith.constant 0 : index
    %c0_1 = arith.constant 0 : index
    %0 = vector.load %arg1[%c0, %c0_0, %c0_1] : memref<2x8x32xf32, #tpu.memory_space<vmem>>, vector<2x8x32xf32>
    %1 = vector.shape_cast %0 : vector<2x8x32xf32> to vector<16x32xf32>
    %2 = arith.truncf %1 : vector<16x32xf32> to vector<16x32xbf16>
    %c0_2 = arith.constant 0 : index
    %c0_3 = arith.constant 0 : index
    %3 = vector.load %arg2[%c0_2, %c0_3] : memref<32x384xbf16, #tpu.memory_space<vmem>>, vector<32x384xbf16>
    %cst = arith.constant dense<0.000000e+00> : vector<16x384xf32>
    %4 = tpu.matmul %2, %3, %cst {dimension_numbers = #tpu.dot_dimension_numbers<[1], [0], [0], [1], [0, 0, 1, 1], [], []>} : vector<16x32xbf16>, vector<32x384xbf16>, vector<16x384xf32> -> vector<16x384xf32>
    %c0_4 = arith.constant 0 : index
    %c0_5 = arith.constant 0 : index
    %5 = vector.load %arg3[%c0_4, %c0_5] : memref<1x384xf32, #tpu.memory_space<vmem>>, vector<1x384xf32>
    %6 = vector.broadcast %5 : vector<1x384xf32> to vector<16x384xf32>
    %7 = arith.addf %4, %6 : vector<16x384xf32>
    %8 = vector.shape_cast %7 : vector<16x384xf32> to vector<2x8x384xf32>
    %9 = vector.extract_strided_slice %8 {offsets = [0, 0, 0], sizes = [2, 8, 128], strides = [1, 1, 1]} : vector<2x8x384xf32> to vector<2x8x128xf32>
    %10 = vector.extract_strided_slice %8 {offsets = [0, 0, 128], sizes = [2, 8, 128], strides = [1, 1, 1]} : vector<2x8x384xf32> to vector<2x8x128xf32>
    %11 = vector.extract_strided_slice %8 {offsets = [0, 0, 256], sizes = [2, 8, 128], strides = [1, 1, 1]} : vector<2x8x384xf32> to vector<2x8x128xf32>
    %12 = arith.truncf %9 : vector<2x8x128xf32> to vector<2x8x128xbf16>
    %13 = arith.truncf %10 : vector<2x8x128xf32> to vector<2x8x128xbf16>
    "tpu.trace_start"() <{level = 10 : i32, message = "bqd,bkd->bqk"}> : () -> ()
    %cst_6 = arith.constant dense<0.000000e+00> : vector<2x8x8xf32>
    %14 = tpu.matmul %12, %13, %cst_6 {dimension_numbers = #tpu.dot_dimension_numbers<[2], [2], [1], [1], [0, 0, 0, 1, 1, 1], [0], [0]>} : vector<2x8x128xbf16>, vector<2x8x128xbf16>, vector<2x8x8xf32> -> vector<2x8x8xf32>
    "tpu.trace_stop"() : () -> ()
    %c0_7 = arith.constant 0 : index
    %c0_8 = arith.constant 0 : index
    %c0_9 = arith.constant 0 : index
    %15 = vector.load %arg4[%c0_7, %c0_8, %c0_9] : memref<2x1x1xi32, #tpu.memory_space<vmem>>, vector<2x1x1xi32>
    %16 = tpu.iota {dimensions = array<i32: 2>} : vector<1x1x8xi32>
    %17 = tpu.iota {dimensions = array<i32: 1>} : vector<1x8x1xi32>
    %18 = vector.broadcast %16 : vector<1x1x8xi32> to vector<2x1x8xi32>
    %19 = vector.broadcast %15 : vector<2x1x1xi32> to vector<2x1x8xi32>
    %20 = arith.cmpi slt, %18, %19 : vector<2x1x8xi32>
    %cst_10 = arith.constant -1.000000e+09 : f32
    %21 = vector.shape_cast %20 : vector<2x1x8xi1> to vector<2x1x8xi1>
    %22 = vector.broadcast %21 : vector<2x1x8xi1> to vector<2x8x8xi1>
    %23 = vector.broadcast %cst_10 : f32 to vector<2x8x8xf32>
    %24 = arith.select %22, %14, %23 : vector<2x8x8xi1>, vector<2x8x8xf32>
    %25 = vector.broadcast %17 : vector<1x8x1xi32> to vector<2x8x1xi32>
    %26 = vector.broadcast %15 : vector<2x1x1xi32> to vector<2x8x1xi32>
    %27 = arith.cmpi slt, %25, %26 : vector<2x8x1xi32>
    %cst_11 = arith.constant -1.000000e+09 : f32
    %28 = vector.shape_cast %27 : vector<2x8x1xi1> to vector<2x8x1xi1>
    %29 = vector.broadcast %28 : vector<2x8x1xi1> to vector<2x8x8xi1>
    %30 = vector.broadcast %cst_11 : f32 to vector<2x8x8xf32>
    %31 = arith.select %29, %24, %30 : vector<2x8x8xi1>, vector<2x8x8xf32>
    %cst_12 = arith.constant dense<0xFF800000> : vector<2x8xf32>
    %32 = vector.multi_reduction <maximumf>, %31, %cst_12 [2] : vector<2x8x8xf32> to vector<2x8xf32>
    %33 = vector.shape_cast %32 : vector<2x8xf32> to vector<2x8x1xf32>
    %34 = vector.broadcast %33 : vector<2x8x1xf32> to vector<2x8x8xf32>
    %35 = arith.subf %31, %34 : vector<2x8x8xf32>
    %36 = math.exp %35 : vector<2x8x8xf32>
    %cst_13 = arith.constant dense<0.000000e+00> : vector<2x8xf32>
    %37 = vector.multi_reduction <add>, %36, %cst_13 [2] : vector<2x8x8xf32> to vector<2x8xf32>
    %38 = vector.shape_cast %37 : vector<2x8xf32> to vector<2x8x1xf32>
    %39 = tpu.reciprocal %38 {approx = true} : vector<2x8x1xf32> -> vector<2x8x1xf32>
    %40 = vector.broadcast %39 : vector<2x8x1xf32> to vector<2x8x8xf32>
    %41 = arith.mulf %36, %40 : vector<2x8x8xf32>
    %42 = arith.truncf %41 : vector<2x8x8xf32> to vector<2x8x8xbf16>
    %43 = arith.truncf %11 : vector<2x8x128xf32> to vector<2x8x128xbf16>
    "tpu.trace_start"() <{level = 10 : i32, message = "bqk,bkd->bqd"}> : () -> ()
    %cst_14 = arith.constant dense<0.000000e+00> : vector<2x8x128xf32>
    %44 = tpu.matmul %42, %43, %cst_14 {dimension_numbers = #tpu.dot_dimension_numbers<[2], [1], [1], [2], [0, 0, 0, 1, 1, 2], [0], [0]>} : vector<2x8x8xbf16>, vector<2x8x128xbf16>, vector<2x8x128xf32> -> vector<2x8x128xf32>
    "tpu.trace_stop"() : () -> ()
    %45 = vector.extract_strided_slice %44 {offsets = [0, 0, 0], sizes = [2, 8, 32], strides = [1, 1, 1]} : vector<2x8x128xf32> to vector<2x8x32xf32>
    %c0_15 = arith.constant 0 : index
    %c0_16 = arith.constant 0 : index
    %c0_17 = arith.constant 0 : index
    %46 = vector.load %arg5[%c0_15, %c0_16, %c0_17] : memref<2x8x32xf32, #tpu.memory_space<vmem>>, vector<2x8x32xf32>
    tpu.vector_store %arg5[%c0_15, %c0_16, %c0_17], %45 {strides = array<i32>} : memref<2x8x32xf32, #tpu.memory_space<vmem>>, vector<2x8x32xf32>,
    return
  }
  func.func @transform_0(%arg0: i32) -> (i32, i32, i32) {
    %c0_i32 = arith.constant 0 : i32
    %c0_i32_0 = arith.constant 0 : i32
    %c0_i32_1 = arith.constant 0 : i32
    return %arg0, %c0_i32, %c0_i32_0 : i32, i32, i32
  }
  func.func @transform_1(%arg0: i32) -> (i32, i32) {
    %c0_i32 = arith.constant 0 : i32
    %c0_i32_0 = arith.constant 0 : i32
    %c0_i32_1 = arith.constant 0 : i32
    return %c0_i32, %c0_i32_0 : i32, i32
  }
  func.func @transform_2(%arg0: i32) -> (i32, i32) {
    %c0_i32 = arith.constant 0 : i32
    %c0_i32_0 = arith.constant 0 : i32
    %c0_i32_1 = arith.constant 0 : i32
    return %c0_i32, %c0_i32_0 : i32, i32
  }
  func.func @transform_3(%arg0: i32) -> (i32, i32, i32) {
    %c0_i32 = arith.constant 0 : i32
    %c0_i32_0 = arith.constant 0 : i32
    %c0_i32_1 = arith.constant 0 : i32
    return %arg0, %c0_i32, %c0_i32_0 : i32, i32, i32
  }
  func.func @transform_4(%arg0: i32) -> (i32, i32, i32) {
    %c0_i32 = arith.constant 0 : i32
    %c0_i32_0 = arith.constant 0 : i32
    %c0_i32_1 = arith.constant 0 : i32
    return %arg0, %c0_i32, %c0_i32_0 : i32, i32, i32
  }
}

</mosaic_0001>

<bundles_post_ra>
// kernel: tpu_custom_call.1
= control target key start
LH: loop header
LB: loop body
LE: loop exit
PB: predicated region body
PF: predicated region fallthrough
CT: control target
= control target key end

     0   :  { %9 = vsyncpa [#allocation3], 0  ;;  %s1301_s0 = inlined_call_operand.hbm [shape: f32[4,8,32], index: 0, kind: input, shape index: {}]   ;;  %s1302_s1 = inlined_call_operand.hbm [shape: bf16[32,384], index: 1, kind: input, shape index: {}]   ;;  %s1303_s2 = inlined_call_operand.vmem [shape: f32[1,384], index: 2, kind: input, shape index: {}]   ;;  %s1304_s3 = inlined_call_operand.vmem [shape: s32[4,1,1], index: 3, kind: input, shape index: {}]   ;;  %s1305_s4 = inlined_call_operand.hbm [shape: f32[4,8,32], index: 4, kind: output, shape index: {}]  }
   0x1   :  { %11 = vsyncpa [#allocation3 + $0x1], 0 }
   0x2   :  { %12 = vsyncpa [#allocation6], 0 }
   0x3   :  { %13 = vsyncpa [#allocation4], 0 }
   0x4   :  { %15 = vsyncpa [#allocation4 + $0x1], 0  ;;  %s1080_s15 = smov 0   ;;  %s1082_s16 = smov 0  }
   0x5   :  { %s1084_s17 = smov 0   ;;  %s1086_s18 = smov 0  }
   0x6 LB: > { %s1101_s19 = sadd.s32 4294967295, %s1041_s18   ;;  %s763_s20 = sadd.s32 4294967294, %s1041_s18   ;;  %s1041_s18 = sphi %s1086_s18, %s1327_s18   ;;  %s1037_s17 = sphi %s1084_s17, %s1326_s17   ;;  %s1033_s16 = sphi %s1082_s16, %s1325_s16   ;;  %s1029_s15 = sphi %s1080_s15, %s1324_s15  }
   0x7   : > { %p41_p0 = scmp.ne.s32.totalorder %s1033_s16, %s1029_s15  ;;  %p1306_p1 = scmp.eq.s32.totalorder %s1101_s19, 0 }
   0x8   : > { %p139_p3 = scmp.eq.s32.totalorder %s763_s20, 1  ;;  %p764_p5 = scmp.ge.s32.totalorder %s1041_s18, 1 }
   0x9   : > { %p1110_p4 = por %p1306_p1, %p41_p0  ;;  %p146_p7 = scmp.lt.s32.totalorder %s1041_s18, 3 }
   0xa   : > { %p1115_p6 = por %p139_p3, %p41_p0  ;;  %s1043_s24 = smov [#allocation5]  }
   0xb   : > { %s1310_s21 = scalar_select %p1110_p4, 1, 0 }
   0xc   : > { %s1311_s22 = scalar_select %p1115_p6, 1, 0 }
   0xd   : > { %p1120_p8 = pnand %p764_p5, %p146_p7  ;;  %s158_s25 = sshll.u32 %s1043_s24, 4  ;;  %s159_s25 = int_to_ptr.vmem [resolvable:$true] %s158_s25 }
   0xe   : > { %s1134_s27 = sadd.s32 1, %s1041_s18   ;;  %s28_s28 = sadd.s32 1, %s1037_s17 }
   0xf   : > { %s1312_s23 = scalar_select %p1120_p8, 1, 0 }
  0x10   : > { %p843_p9 = pneg %p1120_p8  ;;  %s25_s29 = ssub.s32 %s1041_s18, %s1134_s27 }
  0x11   : > { %s930_s30 = scalar_lea.vmem %s159_s25, 768  ;;  %p938_p5 = scmp.lt.s32.totalorder %s159_s25, %s159_s25 }
  0x12   : > { %p1129_p11 = pnand %p843_p9, %p1306_p1  ;;  %p931_p13 = scmp.ne.s32.totalorder %s159_s25, %s930_s30 }
  0x13   : > { %p939_p7 = scmp.lt.s32.totalorder %s930_s30, %s930_s30 }
  0x14   : > { %p921_p12 = pneg %p1129_p11 }
  0x15   : > { %p940_p10 = por %p939_p7, %p938_p5 }
  0x16   : > { %p933_p0 = pnand %p931_p13, %p921_p12 }
  0x18   : > { %p934_p3 = pneg %p933_p0 }
  0x1a   : > { %p941_p2 = pnand %p940_p10, %p934_p3 }
  0x1c   : > { %944 = shalt.err (!%p941_p2)
}
  0x1d   : > { %s1044_s5 = smov 192   ;;  %s1045_s6 = smov 12  }
  0x1e   : > { %846 = dma.hbm_to_vmem [thread:$0]  (!%p1129_p11), %s1302_s1, 768, %s159_s25, [#allocation6], %s1044_s5, %s1044_s5, %s1045_s6  }
  0x1f   : > { %p26_p9 = scmp.eq.s32.totalorder %s25_s29, 0  ;;  %p35_p12 = scmp.ne.s32.totalorder %s1037_s17, %s1033_s16 }
  0x20   : > { %p36_p10 = scmp.eq.s32.totalorder %s1041_s18, 0  ;;  %p856_p2 = scmp.lt.s32.totalorder %s1041_s18, 2 }
  0x21   : > { %s1151_s9 = scalar_select %p26_p9, %s1037_s17, %s28_s28  }
  0x22   : > { %p37_p13 = por %p36_p10, %p35_p12  ;;  %p1314_p0 = scmp.eq.s32.totalorder %s1101_s19, 1 }
  0x23   : > { %s175_s11 = sand.u32 1, %s1037_s17   ;;  %s790_s12 = sshll.u32 %s1041_s18, 8 }
  0x24   : > { %p1155_p3 = por %p1314_p0, %p35_p12  ;;  %s767_s13 = sshll.u32 %s175_s11, 4 }
  0x25   : > { %s1164_s24 = scalar_lea.hbm %s1301_s0, %s790_s12  ;;  %s179_s25 = scalar_lea.vmem [#allocation2], %s767_s13 }
  0x26   : > { %s1315_s10 = scalar_select %p1155_p3, 1, 0 }
  0x27   : > { %s186_s26 = sshll.u32 %s179_s25, 4  ;;  %p1166_p11 = pnand %p856_p2, %p37_p13  ;;  %s1170_s26 = int_to_ptr.vmem [resolvable:$true] %s186_s26 }
  0x28   : > { %s1172_s29 = scalar_lea.sflag [#allocation3], %s175_s11  ;;  %s945_s30 = scalar_lea.hbm %s1164_s24, 256 }
  0x29   : > { %p946_p5 = scmp.ne.s32.totalorder %s1164_s24, %s945_s30  ;;  %p947_p7 = pneg %p1166_p11 }
  0x2a   : > { %s950_s7 = scalar_lea.hbm %s1301_s0, 512  ;;  %p951_p10 = scmp.lt.s32.totalorder %s1164_s24, %s1301_s0 }
  0x2b   : > { %p948_p9 = pnand %p947_p7, %p946_p5  ;;  %p952_p2 = scmp.lt.s32.totalorder %s950_s7, %s945_s30 }
  0x2d   : > { %p949_p12 = pneg %p948_p9  ;;  %p953_p13 = por %p952_p2, %p951_p10 }
  0x2f   : > { %p954_p0 = pnand %p953_p13, %p949_p12 }
  0x31   : > { %957 = shalt.err (!%p954_p0)
}
  0x32   : > { %s958_s11 = scalar_lea.vmem %s1170_s26, 256  ;;  %s1046_s13 = smov [#allocation2]  }
  0x33   : > { %p959_p1 = scmp.ne.s32.totalorder %s1170_s26, %s958_s11  ;;  %s963_s14 = sshll.u32 %s1046_s13, 4  ;;  %s964_s14 = int_to_ptr.vmem [resolvable:$false] %s963_s14 }
  0x34   : > { %s965_s20 = scalar_lea.vmem %s964_s14, 512  ;;  %p966_p9 = scmp.lt.s32.totalorder %s1170_s26, %s964_s14 }
  0x35   : > { %p961_p6 = pnand %p959_p1, %p947_p7  ;;  %p967_p3 = scmp.lt.s32.totalorder %s965_s20, %s958_s11 }
  0x37   : > { %p962_p5 = pneg %p961_p6  ;;  %p968_p4 = por %p967_p3, %p966_p9 }
  0x39   : > { %p969_p8 = pnand %p968_p4, %p962_p5 }
  0x3b   : > { %972 = shalt.err (!%p969_p8)
}
  0x3c   : > { %s1047_s25 = smov 128   ;;  %s1048_s30 = smov 8  }
  0x3d   : > { %850 = dma.hbm_to_vmem [thread:$0]  (!%p1166_p11), %s1164_s24, 256, %s1170_s26, %s1172_s29, %s1047_s25, %s1047_s25, %s1048_s30  }
  0x3e   : > { %p1317_p1 = scmp.ne.s32.totalorder %s1312_s23, 0 }
  0x3f   : > { %s1196_s5 = sand.u32 (!%p1317_p1), 1, %s1033_s16   ;;  %p1318_p4 = scmp.ne.s32.totalorder (!%p1317_p1), %s1310_s21, 0 }
  0x40   : > { %206 = sbr.rel (%p1317_p1) target bundleno = 1012 (0x3f4), region = 36  ;;  %s771_s6 = sshll.u32 (!%p1317_p1), %s1196_s5, 4 }
  0x41   : > { %s209_s7 = scalar_lea.sflag (!%p1317_p1), [#allocation3], %s1196_s5  ;;  %s212_s8 = scalar_lea.vmem (!%p1317_p1), [#allocation2], %s771_s6 }
  0x45   : > { %1016 = dma.done.wait (%p1318_p4), %s209_s7, 256  }
  0x46   : > { %1018 = vsyncadd (%p1318_p4), %s209_s7, 4294967040  ;;  %p1319_p6 = scmp.eq.s32.totalorder %s1101_s19, 0 }
  0x48   : > { %1020 = dma.done.wait (%p1319_p6), [#allocation6], 768   ;;  %p1320_p8 = pmov %p1319_p6 }
  0x49   : > { %v1049_v0 = vmov 0   ;;  %v1050_v1 = vmov 0.0   ;;  %v903_v2 = vld [vmem:[#allocation5 + $0x1c] ss:$12 sps:$4 sm:$0xff]   ;;  %v905_v3 = vld [vmem:[#allocation5 + $0x18] ss:$12 sps:$4 sm:$0xff]   ;;  %v266_v11 = vlaneseq }
  0x4a   : > { %1022 = vsyncadd (%p1320_p8), [#allocation6], 4294966528  ;;  %349 = vmatprep.mubr.bf16.mxu0 %v1049_v0  ;;  %803 = vmatprep.subr.bf16.mxu1 %v1050_v1  ;;  %v906_v4 = vld [vmem:[#allocation5 + $0x4] ss:$12 sps:$4 sm:$0xff]   ;;  %v908_v5 = vld [vmem:[#allocation5] ss:$12 sps:$4 sm:$0xff]  }
  0x4b   : > { %901 = vset.pattern.permute.xlu0 %v1049_v0  ;;  %902 = vset.pattern.permute.xlu1 %v1049_v0  ;;  %v253_v6 = vld [vmem:[%s212_s8] sm:$0xff]  ;;  %v254_v7 = vld [vmem:[%s212_s8 + $0x8] sm:$0xff]  ;;  %vm313_vm0 = vcmask 261120   ;;  %vm1051_vm1 = vmmov 0   ;;  %s774_s21 = sshll.u32 %s1101_s19, 1  ;;  %v267_v12 = vshrl.u32 %v266_v11, 7 }
  0x4c   : > { %329 = vmatprep.subr.bf16.mxu0 %v903_v2  ;;  %v909_v8 = vld [vmem:[#allocation5 + $0x20] ss:$12 sps:$4 sm:$0xff]   ;;  %v255_v9 = vpack.c.bf16 %v254_v7, %v253_v6  ;;  %v910_v10 = vld [vmem:[#allocation5 + $0x8] ss:$12 sps:$4 sm:$0xff]   ;;  %807 = vmatprep.mubr.msk.bf16.mxu1 %vm1051_vm1, %v1050_v1  ;;  %p247_p3 = scmp.lt.s32.totalorder %s774_s21, 3  ;;  %vm565_vm4 = vcmask 1043456  }
  0x4d   : > { %330 = vmatpush1.bf16.msra.mxu0 %v905_v3  ;;  %804 = vmatpush3.bf16.msra.mxu1 %v909_v8  ;;  %v1223_v13 = vsub.s32 0, %v267_v12  ;;  %v272_v20 = vsub.s32 1, %v267_v12  ;;  %v264_v21 = vld [vmem:[%s1303_s2] sm:$0x7]  ;;  %v276_v36 = vsub.s32 2, %v267_v12  ;;  %v488_v50 = vand.u32 127, %v266_v11 }
  0x4e   : > { %331 = vmatprep.subr.bf16.mxu0 %v906_v4  ;;  %805 = vmatprep.subr.bf16.mxu1 %v1050_v1  ;;  %s1329_s21 = smov (!%p247_p3, %s774_s21), 3  ;;  %vm535_vm7 = vcmask 64512   ;;  %s244_s12 = scalar_lea.vmem [#allocation7], %s771_s6 }
  0x4f   : > { %s249_s26 = scalar_lea.vmem %s1304_s3, %s1329_s21  ;;  %v273_v22 = vrot.slane %v264_v21, %v272_v20  ;;  %v269_v26 = vrot.slane %v264_v21, %v1223_v13  ;;  %v277_v37 = vrot.slane %v264_v21, %v276_v36  ;;  %s671_s11 = sshll.u32 %s244_s12, 4  ;;  %s1252_s11 = int_to_ptr.vmem [resolvable:$true] %s671_s11 }
  0x50   : > { %v485_v14 = vld [vmem:[%s249_s26] sm:$0x1]  ;;  %v486_v15 = vld [vmem:[%s249_s26 + $0x1] sm:$0x1]  ;;  %s791_s13 = sshll.u32 %s1101_s19, 8  ;;  %s658_s19 = scalar_lea.sflag [#allocation4], %s1196_s5 }
  0x51   : > { %332 = vmatpush1.bf16.msra.mxu0 %v908_v5  ;;  %806 = vmatpush3.bf16.msra.mxu1 %v910_v10  ;;  %v516_v16 = vrot.slane %v485_v14, %v1223_v13  ;;  %v520_v17 = vrot.slane %v486_v15, %v1223_v13  ;;  %s1257_s25 = scalar_lea.hbm %s1305_s4, %s791_s13  ;;  %s973_s30 = scalar_lea.vmem %s1252_s11, 256 }
  0x52   : > { %811 = vmatprep.subr.bf16.mxu0 %v1050_v1  ;;  %817 = vmatprep.subr.bf16.mxu1 %v1050_v1  ;;  %p974_p11 = scmp.ne.s32.totalorder %s1252_s11, %s973_s30  ;;  %p1321_p7 = scmp.ne.s32.totalorder %s1315_s10, 0 }
  0x53   : > { %492 = vperm.xlu0 %901, %v485_v14   ;;  %vm521_vm2 = vcmp.lt.s32.totalorder %v267_v12, %v516_v16  ;;  %vm522_vm3 = vcmp.lt.s32.totalorder %v267_v12, %v520_v17  ;;  %s1052_s6 = smov [#allocation7]  }
  0x54   : > { %781 = vmatmul.mubr.msk.bf16.vlgmr.msra.gmra.mxu0 %vm313_vm0, %v255_v9  ;;  %808 = vmatmul.mubr.msk.bf16.vlgmr.msra.gmra.mxu1 %vm313_vm0, %v255_v9  ;;  %v523_v18 = vsel %vm521_vm2, 1, %v1049_v0  ;;  %v524_v19 = vsel %vm522_vm3, 1, %v1049_v0  ;;  %p975_p12 = pnand %p974_p11, %p1321_p7  ;;  %s977_s7 = sshll.u32 %s1052_s6, 4  ;;  %s978_s7 = int_to_ptr.vmem [resolvable:$false] %s977_s7 }
  0x55   : > { %813 = vmatprep.mubr.msk.bf16.mxu0 %vm1051_vm1, %v1050_v1  ;;  %819 = vmatprep.mubr.msk.bf16.mxu1 %vm1051_vm1, %v1050_v1  ;;  %s979_s8 = scalar_lea.vmem %s978_s7, 512  ;;  %p980_p2 = scmp.lt.s32.totalorder %s1252_s11, %s978_s7 }
  0x56   : > { %526 = vperm.xlu1 %902, %v523_v18   ;;  %p976_p10 = pneg %p975_p12  ;;  %p981_p13 = scmp.lt.s32.totalorder %s979_s8, %s973_s30 }
  0x57   : > { %499 = vperm.xlu0 %901, %v486_v15  }
  0x58   : > { %p982_p0 = por %p981_p13, %p980_p2 }
  0x5a   : > { %529 = vperm.xlu1 %902, %v524_v19   ;;  %p983_p5 = pnand %p982_p0, %p976_p10 }
  0xce   : > { %v493_v48 = vpop.permute.xlu0 %492 }
  0xcf   : > { %v497_v49 = vrot.slane %v493_v48, %v1223_v13 }
  0xd1   : > { %v527_v51 = vpop.permute.xlu1 %526  ;;  %vm505_vm5 = vcmp.lt.s32.totalorder %v488_v50, %v497_v49 }
  0xd2   : > { %v500_v52 = vpop.permute.xlu0 %499  ;;  %vm531_vm6 = vcmp.eq.s32.totalorder %v527_v51, 1 }
  0xd3   : > { %v504_v53 = vrot.slane %v500_v52, %v1223_v13 }
  0xd5   : > { %v530_v56 = vpop.permute.xlu1 %529  ;;  %vm506_vm8 = vcmp.lt.s32.totalorder %v488_v50, %v504_v53 }
  0xd6   : > { %vm532_vm9 = vcmp.eq.s32.totalorder %v530_v56, 1 }
 0x114   : > { %v351_v23 = vpop.f32.mrf.mxu0  ;;  %v394_v38 = vpop.f32.mrf.mxu1 }
 0x115   : > { %v352_v31 = vadd.f32 %v351_v23, %v269_v26  ;;  %v395_v39 = vadd.f32 %v394_v38, %v277_v37 }
 0x116   : > { %v353_v24 = vpop.f32.mrf.mxu0  ;;  %v809_v40 = vpop.f32.mrf.mxu1 }
 0x117   : > { %v354_v25 = vadd.f32 %v353_v24, %v273_v22  ;;  %v401_v33 = vpack.c.bf16 %v352_v31, %v352_v31  ;;  %v560_v41 = vpack.c.bf16 %v395_v39, %v395_v39 }
 0x118   : > { %v355_v27 = vpop.f32.mrf.mxu0  ;;  %v397_v42 = vpop.f32.mrf.mxu1 }
 0x119   : > { %v403_v28 = vpack.c.bf16 %v354_v25, %v354_v25  ;;  %v356_v34 = vadd.f32 %v355_v27, %v269_v26  ;;  %v567_v43 = vsel %vm565_vm4, %v560_v41, 0  ;;  %v398_v44 = vadd.f32 %v397_v42, %v277_v37 }
 0x11a   : > { %v357_v29 = vpop.f32.mrf.mxu0  ;;  %v810_v45 = vpop.f32.mrf.mxu1 }
 0x11b   : > { %v358_v30 = vadd.f32 %v357_v29, %v273_v22  ;;  %812 = vmatpush3.bf16.xpose.msra.mxu0 %v403_v28  ;;  %v402_v35 = vpack.c.bf16 %v356_v34, %v356_v34  ;;  %v561_v46 = vpack.c.bf16 %v398_v44, %v398_v44 }
 0x11c   : > { %823 = vmatprep.subr.bf16.mxu0 %v1050_v1 }
 0x11d   : > { %v404_v32 = vpack.c.bf16 %v358_v30, %v358_v30  ;;  %v613_v47 = vsel %vm565_vm4, %v561_v46, 0 }
 0x11f   : > { %818 = vmatpush3.bf16.xpose.msra.mxu1 %v404_v32 }
 0x120   : > { %829 = vmatprep.subr.bf16.mxu1 %v1050_v1 }
 0x122   : > { %814 = vmatmul.mubr.bf16.vlgmr.msra.gmra.mxu0 %v401_v33 }
 0x123   : > { %825 = vmatprep.mubr.msk.bf16.mxu0 %vm1051_vm1, %v1050_v1  ;;  %824 = vmatpush3.bf16.msra.mxu0 %v567_v43 }
 0x126   : > { %820 = vmatmul.mubr.bf16.vlgmr.msra.gmra.mxu1 %v402_v35 }
 0x127   : > { %831 = vmatprep.mubr.msk.bf16.mxu1 %vm1051_vm1, %v1050_v1  ;;  %830 = vmatpush3.bf16.msra.mxu1 %v613_v47 }
 0x1e2   : > { %v439_v54 = vpop.f32.mrf.mxu0 }
 0x1e3   : > { %v511_v55 = vsel %vm505_vm5, %v439_v54, -1e+09 }
 0x1e4   : > { %v815_v57 = vpop.f32.mrf.mxu0  ;;  %v533_v58 = vsel %vm531_vm6, %v511_v55, -1e+09 }
 0x1e5   : > { %v536_v59 = vsel %vm535_vm7, %v533_v58, -inf }
 0x1e6   : > { %v479_v60 = vpop.f32.mrf.mxu1  ;;  %537 = vmax.xlane.f32.xlu0 %v536_v59  ;;  %v442_v61 = vpop.f32.mrf.mxu0 }
 0x1e7   : > { %v512_v62 = vsel %vm506_vm8, %v479_v60, -1e+09 }
 0x1e8   : > { %v816_v63 = vpop.f32.mrf.mxu0  ;;  %v821_v0 = vpop.f32.mrf.mxu1  ;;  %v534_v1 = vsel %vm532_vm9, %v512_v62, -1e+09 }
 0x1e9   : > { %v539_v2 = vsel %vm535_vm7, %v534_v1, -inf }
 0x1ea   : > { %540 = vmax.xlane.f32.xlu1 %v539_v2  ;;  %v482_v3 = vpop.f32.mrf.mxu1 }
 0x1ec   : > { %v822_v4 = vpop.f32.mrf.mxu1 }
 0x26f   : > { %v538_v5 = vpop.xlane.xlu0 %537 }
 0x270   : > { %v542_v6 = vsub.f32 %v533_v58, %v538_v5 }
 0x272   : > { %v544_v7 = vmul.f32 1.442695, %v542_v6 }
 0x273   : > { %v541_v8 = vpop.xlane.xlu1 %540 }
 0x274   : > { %911 = vpow2.f32 %v544_v7  ;;  %v543_v9 = vsub.f32 %v534_v1, %v541_v8 }
 0x276   : > { %v546_v10 = vmul.f32 1.442695, %v543_v9 }
 0x278   : > { %913 = vpow2.f32 %v546_v10 }
 0x281   : > { %v912_v11 = vpop.eup %911 }
 0x282   : > { %v548_v12 = vsel %vm535_vm7, %v912_v11, 0.0 }
 0x283   : > { %549 = vadd.xlane.f32.xlu0 %v548_v12 }
 0x285   : > { %v914_v13 = vpop.eup %913 }
 0x286   : > { %v551_v14 = vsel %vm535_vm7, %v914_v13, 0.0 }
 0x287   : > { %552 = vadd.xlane.f32.xlu0 %v551_v14 }
 0x30c   : > { %v550_v15 = vpop.xlane.xlu0 %549 }
 0x30d   : > { %915 = vrcp.f32 %v550_v15 }
 0x310   : > { %v553_v16 = vpop.xlane.xlu0 %552 }
 0x311   : > { %917 = vrcp.f32 %v553_v16 }
 0x31a   : > { %v916_v17 = vpop.eup %915 }
 0x31b   : > { %v556_v18 = vmul.f32 %v916_v17, %v912_v11 }
 0x31d   : > { %v558_v19 = vpack.c.bf16 %v556_v18, %v556_v18 }
 0x31e   : > { %v918_v20 = vpop.eup %917 }
 0x31f   : > { %826 = vmatmul.mubr.msk.bf16.vlgmr.msra.gmra.mxu0 %vm535_vm7, %v558_v19  ;;  %v557_v21 = vmul.f32 %v918_v20, %v914_v13 }
 0x321   : > { %v559_v22 = vpack.c.bf16 %v557_v21, %v557_v21 }
 0x323   : > { %832 = vmatmul.mubr.msk.bf16.vlgmr.msra.gmra.mxu1 %vm535_vm7, %v559_v22 }
 0x3df   : > { %v603_v23 = vpop.f32.mrf.mxu0 }
 0x3e0   : > { %655 = vst.msk [vmem:[%s244_s12] sm:$0xff] %vm313_vm0, %v603_v23 }
 0x3e1   : > { %v827_v24 = vpop.f32.mrf.mxu0 }
 0x3e3   : > { %v606_v25 = vpop.f32.mrf.mxu0  ;;  %v649_v26 = vpop.f32.mrf.mxu1 }
 0x3e4   : > { %656 = vst.msk [vmem:[%s244_s12 + $0x8] sm:$0xff] %vm313_vm0, %v649_v26 }
 0x3e5   : > { %v828_v27 = vpop.f32.mrf.mxu0  ;;  %v833_v28 = vpop.f32.mrf.mxu1 }
 0x3e6   : > { %986 = shalt.err (!%p983_p5)
}
 0x3e7   : > { %s987_s21 = scalar_lea.hbm %s1257_s25, 256  ;;  %s991_s26 = scalar_lea.hbm %s1305_s4, 512 }
 0x3e8   : > { %p988_p9 = scmp.ne.s32.totalorder %s1257_s25, %s987_s21  ;;  %p992_p6 = scmp.lt.s32.totalorder %s1257_s25, %s1305_s4 }
 0x3e9   : > { %p993_p8 = scmp.lt.s32.totalorder %s991_s26, %s987_s21 }
 0x3ea   : > { %p989_p1 = pnand %p988_p9, %p1321_p7 }
 0x3eb   : > { %p994_p3 = por %p993_p8, %p992_p6 }
 0x3ec   : > { %p990_p4 = pneg %p989_p1 }
 0x3ee   : > { %p995_p11 = pnand %p994_p3, %p990_p4 }
 0x3f0   : > { %998 = shalt.err (!%p995_p11)
}
 0x3f1   : > { %s1053_s12 = smov 128   ;;  %s1054_s13 = smov 8   ;;  %v652_v29 = vpop.f32.mrf.mxu1 }
 0x3f2   : > { %841 = dma.vmem_to_hbm [thread:$0]  (%p1321_p7), %s1252_s11, 256, %s1257_s25, %s658_s19, %s1053_s12, %s1053_s12, %s1054_s13  }
 0x3f3   : > { %v834_v30 = vpop.f32.mrf.mxu1 }
 0x3f4 PF: > { %s686_s14 = sand.u32 1, %s1029_s15   ;;  %p1322_p12 = scmp.ne.s32.totalorder %s1311_s22, 0 }
 0x3f5   : > { %p1323_p10 = scmp.ge.s32.totalorder %s1041_s18, 2  ;;  %s687_s20 = scalar_lea.sflag [#allocation4], %s686_s14 }
 0x3f7   : > { %p852_p2 = pnand %p1323_p10, %p1322_p12 }
 0x3f9   : > { %p853_p13 = pneg %p852_p2 }
 0x3fb   : > { %1024 = dma.done.wait (%p853_p13), %s687_s20, 256  }
 0x3fc   : > { %1026 = vsyncadd (%p853_p13), %s687_s20, 4294967040  ;;  %p18_p7 = scmp.ge.s32.totalorder %s1134_s27, 4   ;;  %s1324_s15 = smov %s1033_s16 }
 0x3fd   : > { %s1325_s16 = smov %s1037_s17  ;;  %s1326_s17 = smov %s1151_s9 }
 0x3fe   : > { %s1327_s18 = smov %s1134_s27  ;;  %20 = sbr.rel (!%p18_p7) target bundleno = 6 (0x6), region = 88 }
 0x403   :  { %692 = vsyncpa [#allocation3], 1 }
 0x404   :  { %694 = vsyncpa [#allocation3 + $0x1], 1 }
 0x405   :  { %695 = vsyncpa [#allocation6], 1 }
 0x406   :  { %696 = vsyncpa [#allocation4], 1 }
 0x407   :  { %698 = vsyncpa [#allocation4 + $0x1], 1 }

</bundles_post_ra>
